<compile_context>
chip_gen: v7x
topology: tpu7x:2x2x1
jax: 0.10.0
libtpu: 0.0.40
codegen_flags: <defaults>
</compile_context>

<pallas_src>
import jax
import jax.numpy as jnp
from jax import lax
from jax.experimental import pallas as pl
from jax.experimental.pallas import tpu as pltpu


def _rbm_forward_kernel(x_ref, z_ref, w_ref, b_ref, c_ref, o_ref,
                        acc_xw_ref, acc_obs_ref):
    k = pl.program_id(1)
    nk = pl.num_programs(1)

    X = x_ref[...]            # [tn, tk] f32 chunk of the batch tile
    W = w_ref[...]            # [tk, dz] f32 chunk of the weights
    b = b_ref[...]            # [1, tk]  f32 chunk of b

    @pl.when(k == 0)
    def _init():
        acc_xw_ref[...] = jnp.zeros_like(acc_xw_ref)
        acc_obs_ref[...] = jnp.zeros_like(acc_obs_ref)

    # Partial X @ W on the MXU, f32 accumulation.
    acc_xw_ref[...] += jnp.dot(X, W, preferred_element_type=jnp.float32)

    # Per-row partial sum of X*(X+b) == X^2 + X*b via an MXU ones-contraction
    # contracting the last dims of both operands, so the per-row scalars land
    # lane-dense in a [1, tn] vector.
    dn = (((1,), (1,)), ((), ()))
    obs_terms = X * (X + b)                                        # [tn, tk]
    ones_dx = jnp.ones((1, obs_terms.shape[1]), jnp.float32)
    acc_obs_ref[...] += lax.dot_general(
        ones_dx, obs_terms, dn, preferred_element_type=jnp.float32)  # [1, tn]

    @pl.when(k == nk - 1)
    def _finalize():
        Z_ = z_ref[...].astype(jnp.float32)       # bf16 {0,1} plane -> f32
        c = c_ref[...]                            # [1, dz]
        lat_terms = (acc_xw_ref[...] + c) * Z_    # [tn, dz]
        ones_dz = jnp.ones((1, lat_terms.shape[1]), jnp.float32)
        lat = lax.dot_general(
            ones_dz, lat_terms, dn, preferred_element_type=jnp.float32)
        # Single fused negate: -(sum((XW+c)Z_) + X.b + |X|^2)
        o_ref[...] = -(lat + acc_obs_ref[...])    # [1, tn]


def _vmem_budget_bytes():
    """Generation-aware scoped-VMEM budget: ~3/4 of physical VMEM, capped."""
    cap = None
    try:
        cap = getattr(pltpu.get_tpu_info(), "vmem_capacity_bytes", None)
    except Exception:
        cap = None
    if not cap:
        cap = 64 * 1024 * 1024          # conservative (v7x-sized) default
    return int(min(cap * 3 // 4, 96 * 1024 * 1024))


def _round_down_multiple(x, m):
    return (x // m) * m


def gaussian_rbm_forward(X, Z, W, b, c, *,
                         target_tile_bytes=4 * 1024 * 1024,
                         max_dx_block=None,
                         vmem_budget_bytes=None):
    """X: [n, dx], Z: [n, dz, 2] one-hot, W: [dx, dz], b: [dx], c: [dz].
    Returns log_joint: [n] (matches PyTorch GaussianRBM.forward)."""
    n, dx = X.shape
    dz = W.shape[1]
    assert Z.shape == (n, dz, 2)
    assert W.shape == (dx, dz)

    X = X.astype(jnp.float32)
    Z_ = Z[..., 1].astype(jnp.bfloat16)               # lossless for a one-hot plane
    W = W.astype(jnp.float32)
    b_row = b.astype(jnp.float32).reshape(1, dx)
    c_row = c.astype(jnp.float32).reshape(1, dz)

    budget = int(vmem_budget_bytes or _vmem_budget_bytes())

    # ---- dx (reduction) tile: resident W if it fits ~1/3 of the budget,
    # otherwise chunk dx in multiples of 128 along a "k" grid axis. ----
    if max_dx_block is not None:
        tk_cap = int(max_dx_block)
    else:
        tk_cap = max(128, (budget // 3) // (2 * 4 * dz))   # W rows per chunk
    dx_pad = dx
    if dx <= tk_cap:
        tk = dx
    else:
        tk = 0
        t = _round_down_multiple(tk_cap, 128)
        while t >= 128:                       # prefer a chunk that divides dx
            if dx % t == 0:
                tk = t
                break
            t -= 128
        if tk == 0:                           # no divisor: zero-pad dx (exact)
            tk = max(128, _round_down_multiple(tk_cap, 128))
            dx_pad = pl.cdiv(dx, tk) * tk
            X = jnp.pad(X, ((0, 0), (0, dx_pad - dx)))
            W = jnp.pad(W, ((0, dx_pad - dx), (0, 0)))
            b_row = jnp.pad(b_row, ((0, 0), (0, dx_pad - dx)))
    num_k = dx_pad // tk

    # ---- row tile: sized from a bytes-per-step target, clamped to the VMEM
    # budget, then capped for 2-TC (v7x) balance and to fit the batch. ----
    per_row_bytes = 4 * tk + 2 * dz + 4       # f32 X chunk + bf16 Z_ + f32 out
    tn = max(128, _round_down_multiple(target_tile_bytes // per_row_bytes, 128))

    def _vmem_need(t):
        return (2 * (t * tk * 4 + t * dz * 2 + t * 4)    # double-buffered X/Z_/out
                + t * dz * 4 + t * 4                     # f32 scratch accumulators
                + 2 * (tk * dz * 4 + tk * 4 + dz * 4))   # W/b/c blocks (x2 buffers)

    while tn > 128 and _vmem_need(tn) > budget:
        tn -= 128

    if n < 128:
        tn = n                                  # single block == full batch
    else:
        if n >= 4 * 128:
            tn = min(tn, max(128, _round_down_multiple(n // 4, 128)))
        elif n >= 2 * 128:
            tn = min(tn, max(128, _round_down_multiple(n // 2, 128)))
        tn = min(tn, _round_down_multiple(n, 128))   # only the last block ragged

    grid = (pl.cdiv(n, tn), num_k)

    flops = 2 * n * dx_pad * dz + 2 * n * (dx_pad + dz) + 3 * n * dz + 2 * n * dx_pad
    bytes_accessed = (4 * n * dx_pad + 2 * n * dz + 4 * dx_pad * dz
                      + 4 * (dx_pad + dz) + 4 * n)

    out = pl.pallas_call(
        _rbm_forward_kernel,
        out_shape=jax.ShapeDtypeStruct((1, n), jnp.float32),
        grid=grid,
        in_specs=[
            pl.BlockSpec((tn, tk), lambda i, k: (i, k)),    # X chunk (streamed)
            pl.BlockSpec((tn, dz), lambda i, k: (i, 0)),    # Z_ (once per row tile)
            pl.BlockSpec((tk, dz), lambda i, k: (k, 0)),    # W chunk
            pl.BlockSpec((1, tk), lambda i, k: (0, k)),     # b chunk
            pl.BlockSpec((1, dz), lambda i, k: (0, 0)),     # c (resident)
        ],
        out_specs=pl.BlockSpec((1, tn), lambda i, k: (0, i)),   # lane-dense rows
        scratch_shapes=[
            pltpu.VMEM((tn, dz), jnp.float32),   # X@W accumulator
            pltpu.VMEM((1, tn), jnp.float32),    # per-row sum(X^2 + X*b)
        ],
        compiler_params=pltpu.CompilerParams(
            dimension_semantics=("parallel", "arbitrary"),
            vmem_limit_bytes=budget,
        ),
        cost_estimate=pl.CostEstimate(
            flops=flops, transcendentals=0, bytes_accessed=bytes_accessed),
    )(X, Z_, W, b_row, c_row)
    return out[0]


def _reference_forward(X, Z, W, b, c):
    hp = lax.Precision.HIGHEST
    Z_ = jnp.sum(Z * jnp.arange(2, dtype=Z.dtype), axis=2)
    log_joint = -jnp.sum((jnp.dot(X, W, precision=hp) + c) * Z_, axis=1)
    log_joint += -jnp.dot(X, b, precision=hp) - jnp.sum(X ** 2, axis=1)
    return log_joint


def _make_inputs(key, n, dx, dz):
    k_x, k_z, k_w, k_b, k_c = jax.random.split(key, 5)
    W = 0.1 * jax.random.normal(k_w, (dx, dz), dtype=jnp.float32)
    b = 0.1 * jax.random.normal(k_b, (dx,), dtype=jnp.float32)
    c = 0.1 * jax.random.normal(k_c, (dz,), dtype=jnp.float32)
    X = jax.random.normal(k_x, (n, dx), dtype=jnp.float32)
    z_bits = jax.random.bernoulli(k_z, 0.5, (n, dz)).astype(jnp.int32)
    Z = jax.nn.one_hot(z_bits, 2, dtype=jnp.float32)          # [n, dz, 2]
    return X, Z, W, b, c


if __name__ == "__main__":
    key = jax.random.PRNGKey(0)
    k1, k2, k3 = jax.random.split(key, 3)

    # Small shapes consistent with the module (batch=8, dx=16, dz=32).
    X, Z, W, b, c = _make_inputs(k1, n=8, dx=16, dz=32)
    out = jax.block_until_ready(gaussian_rbm_forward(X, Z, W, b, c))
    ref = _reference_forward(X, Z, W, b, c)
    assert out.shape == (8,)
    assert jnp.allclose(out, ref, atol=1e-4, rtol=1e-4), (out, ref)

    # Ragged batch: multi-tile row grid with a masked partial last block
    # (no wrapper-side padding pass).
    X2, Z2, W2, b2, c2 = _make_inputs(k2, n=300, dx=24, dz=40)
    out2 = jax.block_until_ready(gaussian_rbm_forward(X2, Z2, W2, b2, c2))
    ref2 = _reference_forward(X2, Z2, W2, b2, c2)
    assert out2.shape == (300,)
    assert jnp.allclose(out2, ref2, atol=1e-4, rtol=1e-4)

    # dx-reduction tiling path: grid (rows, k) with k > 1 and W chunked.
    X3, Z3, W3, b3, c3 = _make_inputs(k3, n=256, dx=256, dz=32)
    out3 = jax.block_until_ready(
        gaussian_rbm_forward(X3, Z3, W3, b3, c3, max_dx_block=128))
    ref3 = _reference_forward(X3, Z3, W3, b3, c3)
    assert out3.shape == (256,)
    assert jnp.allclose(out3, ref3, atol=1e-4, rtol=1e-4)

    print("KERNEL_OK")
</pallas_src>

<mosaic_0001>
module attributes {stable_mosaic.version = 11 : i64} {
  func.func @_rbm_forward_kernel(%arg0: i32, %arg1: i32, %arg2: memref<8x16xf32, #tpu.memory_space<vmem>>, %arg3: memref<8x32xbf16, #tpu.memory_space<vmem>>, %arg4: memref<16x32xf32, #tpu.memory_space<vmem>>, %arg5: memref<1x16xf32, #tpu.memory_space<vmem>>, %arg6: memref<1x32xf32, #tpu.memory_space<vmem>>, %arg7: memref<1x8xf32, #tpu.memory_space<vmem>>, %arg8: memref<8x32xf32, #tpu.memory_space<vmem>>, %arg9: memref<1x8xf32, #tpu.memory_space<vmem>>) attributes {dimension_semantics = [#tpu.dimension_semantics<parallel>, #tpu.dimension_semantics<arbitrary>], iteration_bounds = array<i64: 1, 1>, scalar_prefetch = 0 : i64, scratch_operands = 2 : i64, tpu.core_type = #tpu.core_type<tc>, window_params = [{transform_indices = @transform_0, window_bounds = array<i64: 8, 16>}, {transform_indices = @transform_1, window_bounds = array<i64: 8, 32>}, {transform_indices = @transform_2, window_bounds = array<i64: 16, 32>}, {transform_indices = @transform_3, window_bounds = array<i64: 1, 16>}, {pipeline_mode = #tpu.pipeline_mode<synchronous>, transform_indices = @transform_4, window_bounds = array<i64: 1, 32>}, {transform_indices = @transform_5, window_bounds = array<i64: 1, 8>}]} {
    %c0 = arith.constant 0 : index
    %c0_0 = arith.constant 0 : index
    %0 = vector.load %arg2[%c0, %c0_0] : memref<8x16xf32, #tpu.memory_space<vmem>>, vector<8x16xf32>
    %c0_1 = arith.constant 0 : index
    %c0_2 = arith.constant 0 : index
    %1 = vector.load %arg4[%c0_1, %c0_2] : memref<16x32xf32, #tpu.memory_space<vmem>>, vector<16x32xf32>
    %c0_3 = arith.constant 0 : index
    %c0_4 = arith.constant 0 : index
    %2 = vector.load %arg5[%c0_3, %c0_4] : memref<1x16xf32, #tpu.memory_space<vmem>>, vector<1x16xf32>
    %c0_i32 = arith.constant 0 : i32
    %3 = arith.cmpi eq, %arg1, %c0_i32 : i32
    %4 = arith.extui %3 : i1 to i32
    %c0_i32_5 = arith.constant 0 : i32
    %5 = arith.cmpi ne, %4, %c0_i32_5 : i32
    scf.if %5 {
      %cst_18 = arith.constant 0.000000e+00 : f32
      %21 = vector.broadcast %cst_18 : f32 to vector<8x32xf32>
      %c0_19 = arith.constant 0 : index
      %c0_20 = arith.constant 0 : index
      %22 = vector.load %arg8[%c0_19, %c0_20] : memref<8x32xf32, #tpu.memory_space<vmem>>, vector<8x32xf32>
      tpu.vector_store %arg8[%c0_19, %c0_20], %21 {strides = array<i32>} : memref<8x32xf32, #tpu.memory_space<vmem>>, vector<8x32xf32>,
      %cst_21 = arith.constant 0.000000e+00 : f32
      %23 = vector.broadcast %cst_21 : f32 to vector<1x8xf32>
      %c0_22 = arith.constant 0 : index
      %c0_23 = arith.constant 0 : index
      %24 = vector.load %arg9[%c0_22, %c0_23] : memref<1x8xf32, #tpu.memory_space<vmem>>, vector<1x8xf32>
      tpu.vector_store %arg9[%c0_22, %c0_23], %23 {strides = array<i32>} : memref<1x8xf32, #tpu.memory_space<vmem>>, vector<1x8xf32>,
    } else {
    }
    %c0_6 = arith.constant 0 : index
    %c0_7 = arith.constant 0 : index
    %6 = vector.load %arg8[%c0_6, %c0_7] : memref<8x32xf32, #tpu.memory_space<vmem>>, vector<8x32xf32>
    %cst = arith.constant dense<0.000000e+00> : vector<8x32xf32>
    %7 = tpu.matmul %0, %1, %cst {dimension_numbers = #tpu.dot_dimension_numbers<[1], [0], [0], [1], [0, 0, 1, 1], [], []>} : vector<8x16xf32>, vector<16x32xf32>, vector<8x32xf32> -> vector<8x32xf32>
    %8 = arith.addf %6, %7 : vector<8x32xf32>
    %c0_8 = arith.constant 0 : index
    %c0_9 = arith.constant 0 : index
    %9 = vector.load %arg8[%c0_8, %c0_9] : memref<8x32xf32, #tpu.memory_space<vmem>>, vector<8x32xf32>
    tpu.vector_store %arg8[%c0_8, %c0_9], %8 {strides = array<i32>} : memref<8x32xf32, #tpu.memory_space<vmem>>, vector<8x32xf32>,
    %10 = vector.broadcast %2 : vector<1x16xf32> to vector<8x16xf32>
    %11 = arith.addf %0, %10 : vector<8x16xf32>
    %12 = arith.mulf %0, %11 : vector<8x16xf32>
    %cst_10 = arith.constant 1.000000e+00 : f32
    %13 = vector.broadcast %cst_10 : f32 to vector<1x16xf32>
    %c0_11 = arith.constant 0 : index
    %c0_12 = arith.constant 0 : index
    %14 = vector.load %arg9[%c0_11, %c0_12] : memref<1x8xf32, #tpu.memory_space<vmem>>, vector<1x8xf32>
    %cst_13 = arith.constant dense<0.000000e+00> : vector<1x8xf32>
    %15 = tpu.matmul %13, %12, %cst_13 {dimension_numbers = #tpu.dot_dimension_numbers<[1], [1], [0], [0], [0, 0, 1, 0], [], []>} : vector<1x16xf32>, vector<8x16xf32>, vector<1x8xf32> -> vector<1x8xf32>
    %16 = arith.addf %14, %15 : vector<1x8xf32>
    %c0_14 = arith.constant 0 : index
    %c0_15 = arith.constant 0 : index
    %17 = vector.load %arg9[%c0_14, %c0_15] : memref<1x8xf32, #tpu.memory_space<vmem>>, vector<1x8xf32>
    tpu.vector_store %arg9[%c0_14, %c0_15], %16 {strides = array<i32>} : memref<1x8xf32, #tpu.memory_space<vmem>>, vector<1x8xf32>,
    %c0_i32_16 = arith.constant 0 : i32
    %18 = arith.cmpi eq, %arg1, %c0_i32_16 : i32
    %19 = arith.extui %18 : i1 to i32
    %c0_i32_17 = arith.constant 0 : i32
    %20 = arith.cmpi ne, %19, %c0_i32_17 : i32
    scf.if %20 {
      %c0_18 = arith.constant 0 : index
      %c0_19 = arith.constant 0 : index
      %21 = vector.load %arg3[%c0_18, %c0_19] : memref<8x32xbf16, #tpu.memory_space<vmem>>, vector<8x32xbf16>
      %22 = arith.extf %21 : vector<8x32xbf16> to vector<8x32xf32>
      %c0_20 = arith.constant 0 : index
      %c0_21 = arith.constant 0 : index
      %23 = vector.load %arg6[%c0_20, %c0_21] : memref<1x32xf32, #tpu.memory_space<vmem>>, vector<1x32xf32>
      %c0_22 = arith.constant 0 : index
      %c0_23 = arith.constant 0 : index
      %24 = vector.load %arg8[%c0_22, %c0_23] : memref<8x32xf32, #tpu.memory_space<vmem>>, vector<8x32xf32>
      %25 = vector.broadcast %23 : vector<1x32xf32> to vector<8x32xf32>
      %26 = arith.addf %24, %25 : vector<8x32xf32>
      %27 = arith.mulf %26, %22 : vector<8x32xf32>
      %cst_24 = arith.constant 1.000000e+00 : f32
      %28 = vector.broadcast %cst_24 : f32 to vector<1x32xf32>
      %cst_25 = arith.constant dense<0.000000e+00> : vector<1x8xf32>
      %29 = tpu.matmul %28, %27, %cst_25 {dimension_numbers = #tpu.dot_dimension_numbers<[1], [1], [0], [0], [0, 0, 1, 0], [], []>} : vector<1x32xf32>, vector<8x32xf32>, vector<1x8xf32> -> vector<1x8xf32>
      %c0_26 = arith.constant 0 : index
      %c0_27 = arith.constant 0 : index
      %30 = vector.load %arg9[%c0_26, %c0_27] : memref<1x8xf32, #tpu.memory_space<vmem>>, vector<1x8xf32>
      %31 = arith.addf %29, %30 : vector<1x8xf32>
      %cst_28 = arith.constant 0.000000e+00 : f32
      %32 = vector.broadcast %cst_28 : f32 to vector<1x8xf32>
      %33 = arith.subf %32, %31 : vector<1x8xf32>
      %c0_29 = arith.constant 0 : index
      %c0_30 = arith.constant 0 : index
      %34 = vector.load %arg7[%c0_29, %c0_30] : memref<1x8xf32, #tpu.memory_space<vmem>>, vector<1x8xf32>
      tpu.vector_store %arg7[%c0_29, %c0_30], %33 {strides = array<i32>} : memref<1x8xf32, #tpu.memory_space<vmem>>, vector<1x8xf32>,
    } else {
    }
    return
  }
  func.func @transform_0(%arg0: i32, %arg1: i32) -> (i32, i32) {
    %c0_i32 = arith.constant 0 : i32
    return %arg0, %arg1 : i32, i32
  }
  func.func @transform_1(%arg0: i32, %arg1: i32) -> (i32, i32) {
    %c0_i32 = arith.constant 0 : i32
    %c0_i32_0 = arith.constant 0 : i32
    return %arg0, %c0_i32 : i32, i32
  }
  func.func @transform_2(%arg0: i32, %arg1: i32) -> (i32, i32) {
    %c0_i32 = arith.constant 0 : i32
    %c0_i32_0 = arith.constant 0 : i32
    return %arg1, %c0_i32 : i32, i32
  }
  func.func @transform_3(%arg0: i32, %arg1: i32) -> (i32, i32) {
    %c0_i32 = arith.constant 0 : i32
    %c0_i32_0 = arith.constant 0 : i32
    return %c0_i32, %arg1 : i32, i32
  }
  func.func @transform_4(%arg0: i32, %arg1: i32) -> (i32, i32) {
    %c0_i32 = arith.constant 0 : i32
    %c0_i32_0 = arith.constant 0 : i32
    %c0_i32_1 = arith.constant 0 : i32
    return %c0_i32, %c0_i32_0 : i32, i32
  }
  func.func @transform_5(%arg0: i32, %arg1: i32) -> (i32, i32) {
    %c0_i32 = arith.constant 0 : i32
    %c0_i32_0 = arith.constant 0 : i32
    return %c0_i32, %arg0 : i32, i32
  }
}

</mosaic_0001>

<bundles_post_ra>
// kernel: tpu_custom_call.1
= control target key start
LH: loop header
LB: loop body
LE: loop exit
PB: predicated region body
PF: predicated region fallthrough
CT: control target
= control target key end

     0   :  { %10 = vsyncpa [#allocation5], 0  ;;  %s584_s0 = inlined_call_operand.hbm [shape: f32[8,16], index: 0, kind: input, shape index: {}]   ;;  %s585_s1 = inlined_call_operand.hbm [shape: bf16[8,32], index: 1, kind: input, shape index: {}]   ;;  %s586_s2 = inlined_call_operand.hbm [shape: f32[16,32], index: 2, kind: input, shape index: {}]   ;;  %s587_s3 = inlined_call_operand.vmem [shape: f32[1,16], index: 3, kind: input, shape index: {}]   ;;  %s588_s4 = inlined_call_operand.vmem [shape: f32[1,32], index: 4, kind: input, shape index: {}]   ;;  %s589_s5 = inlined_call_operand.hbm [shape: f32[1,8], index: 5, kind: output, shape index: {}]  }
   0x1   :  { %11 = vsyncpa [#allocation8], 0 }
   0x2   :  { %12 = vsyncpa [#allocation6], 0  ;;  %s483_s18 = smov [#allocation7]   ;;  %s484_s20 = smov [#allocation4]  }
   0x3   :  { %s29_s19 = sshll.u32 %s483_s18, 4  ;;  %s19_s21 = sshll.u32 %s484_s20, 4  ;;  %s30_s19 = int_to_ptr.vmem [resolvable:$true] %s29_s19  ;;  %s20_s21 = int_to_ptr.vmem [resolvable:$true] %s19_s21 }
   0x4   :  { %s389_s24 = scalar_lea.hbm %s585_s1, 64 }
   0x5   :  { %p390_p0 = scmp.ne.s32.totalorder %s585_s1, %s389_s24  ;;  %p393_p1 = scmp.lt.u32.totalorder %s389_s24, %s585_s1 }
   0x7   :  { %p395_p2 = pnand %p393_p1, %p390_p0 }
   0x9   :  { %398 = shalt.err (!%p395_p2)
}
   0xa   :  { %s399_s29 = scalar_lea.vmem %s30_s19, 64  ;;  %p404_p4 = scmp.lt.s32.totalorder %s30_s19, %s30_s19 }
   0xb   :  { %p400_p3 = scmp.ne.s32.totalorder %s30_s19, %s399_s29  ;;  %p405_p5 = scmp.lt.s32.totalorder %s399_s29, %s399_s29 }
   0xd   :  { %p406_p6 = por %p405_p5, %p404_p4 }
   0xf   :  { %p407_p7 = pnand %p406_p6, %p400_p3 }
  0x11   :  { %410 = shalt.err (!%p407_p7)
}
  0x12   :  { %32 = dma.hbm_to_vmem [thread:$0]  %s585_s1, 64, %s30_s19, [#allocation8]  }
  0x13   :  { %s411_s9 = scalar_lea.hbm %s584_s0, 128 }
  0x14   :  { %p412_p8 = scmp.ne.s32.totalorder %s584_s0, %s411_s9  ;;  %p415_p9 = scmp.lt.u32.totalorder %s411_s9, %s584_s0 }
  0x16   :  { %p417_p10 = pnand %p415_p9, %p412_p8 }
  0x18   :  { %420 = shalt.err (!%p417_p10)
}
  0x19   :  { %s421_s14 = scalar_lea.vmem %s20_s21, 128  ;;  %p426_p12 = scmp.lt.s32.totalorder %s20_s21, %s20_s21 }
  0x1a   :  { %p422_p11 = scmp.ne.s32.totalorder %s20_s21, %s421_s14  ;;  %p427_p13 = scmp.lt.s32.totalorder %s421_s14, %s421_s14 }
  0x1c   :  { %p428_p0 = por %p427_p13, %p426_p12 }
  0x1e   :  { %p429_p1 = pnand %p428_p0, %p422_p11 }
  0x20   :  { %432 = shalt.err (!%p429_p1)
}
  0x21   :  { %22 = dma.hbm_to_vmem [thread:$0]  %s584_s0, 128, %s20_s21, [#allocation5]  }
  0x22   :  { %s485_s16 = smov [#allocation9]   ;;  %s433_s20 = scalar_lea.hbm %s586_s2, 256 }
  0x23   :  { %s38_s17 = sshll.u32 %s485_s16, 4  ;;  %p434_p2 = scmp.ne.s32.totalorder %s586_s2, %s433_s20  ;;  %s39_s17 = int_to_ptr.vmem [resolvable:$true] %s38_s17 }
  0x24   :  { %p437_p3 = scmp.lt.u32.totalorder %s433_s20, %s586_s2 }
  0x26   :  { %p439_p4 = pnand %p437_p3, %p434_p2 }
  0x28   :  { %442 = shalt.err (!%p439_p4)
}
  0x29   :  { %s443_s26 = scalar_lea.vmem %s39_s17, 256  ;;  %p448_p6 = scmp.lt.s32.totalorder %s39_s17, %s39_s17 }
  0x2a   :  { %p444_p5 = scmp.ne.s32.totalorder %s39_s17, %s443_s26  ;;  %p449_p7 = scmp.lt.s32.totalorder %s443_s26, %s443_s26 }
  0x2c   :  { %p450_p8 = por %p449_p7, %p448_p6 }
  0x2e   :  { %p451_p9 = pnand %p450_p8, %p444_p5 }
  0x30   :  { %454 = shalt.err (!%p451_p9)
}
  0x31   :  { %s486_s0 = smov 128   ;;  %s487_s21 = smov 8  }
  0x32   :  { %44 = dma.hbm_to_vmem [thread:$0]  %s586_s2, 256, %s39_s17, [#allocation8], %s486_s0, %s486_s0, %s487_s21  }
  0x33   :  { %477 = dma.done.wait [#allocation5], 128  }
  0x34   :  { %478 = vsyncadd [#allocation5], 4294967168 }
  0x35   :  { %479 = dma.done.wait [#allocation8], 320  }
  0x36   :  { %480 = vsyncadd [#allocation8], 4294966976  ;;  %v488_v0 = vmov 0.0|0.0   ;;  %vm489_vm0 = vmmov 0   ;;  %v490_v1 = vmov 0.0   ;;  %vm66_vm1 = vcmask 261120  }
  0x37   :  { %376 = vmatprep.subr.bf16.mxu0 %v488_v0  ;;  %363 = vmatprep.mubr.msk.f32.mxu0 %vm489_vm0, %v490_v1  ;;  %67 = vst.msk [vmem:[#allocation2] sm:$0xff] %vm66_vm1, %v490_v1  ;;  %v59_v2 = vld [vmem:[#allocation9] sm:$0xff]  ;;  %v60_v3 = vld [vmem:[#allocation9 + $0x8] sm:$0xff]  ;;  %v58_v5 = vld [vmem:[#allocation4] sm:$0xff]  ;;  %vm71_vm2 = vcmask 130048   ;;  %v491_v9 = vmov 1.0  }
  0x38   :  { %366 = vmatprep.subr.mxu1 %v490_v1  ;;  %368 = vmatprep.mubr.msk.f32.mxu1 %vm489_vm0, %v490_v1  ;;  %v377_v4 = vpack.c.bf16 %v60_v3, %v59_v2  ;;  %v346_v6 = vld [vmem:[%s587_s3] ss:$0 sm:$0xff]  ;;  %vm68_vm3 = vcmask 57344   ;;  %v239_v14 = vld [vmem:[#allocation7] sm:$0xf]  ;;  %s492_s3 = smov [#allocation10]  }
  0x39   :  { %v154_v7 = vadd.f32 %v346_v6, %v58_v5  ;;  %69 = vst.msk [vmem:[#allocation3] sm:$0x1] %vm68_vm3, %v490_v1  ;;  %v349_v15 = vld [vmem:[%s588_s4] ss:$0 sm:$0xff]  ;;  %v240_v16 = vunpack.c.l.bf16 %v239_v14  ;;  %s335_s7 = sshll.u32 %s492_s3, 4  ;;  %s336_s7 = int_to_ptr.vmem [resolvable:$true] %s335_s7 }
  0x3a   :  { %378 = vmatpush3.bf16.msra.mxu0 %v377_v4  ;;  %s455_s4 = scalar_lea.vmem %s336_s7, 16  ;;  %s459_s8 = scalar_lea.vmem %s336_s7, 32 }
  0x3b   :  { %371 = vmatprep.subr.mxu0 %v490_v1  ;;  %v155_v8 = vmul.f32 %v154_v7, %v58_v5  ;;  %p456_p10 = scmp.ne.s32.totalorder %s336_s7, %s455_s4  ;;  %p460_p11 = scmp.lt.s32.totalorder %s336_s7, %s336_s7 }
  0x3c   :  { %p461_p12 = scmp.lt.s32.totalorder %s459_s8, %s455_s4 }
  0x3d   :  { %364 = vmatmul.mubr.msk.f32.vlgmr.msra.gmra.mrb[0].mxu0 %vm71_vm2, %v58_v5  ;;  %367 = vmatpush3.xpose.msk.msra.mxu1 %vm71_vm2, %v155_v8 }
  0x3e   :  { %373 = vmatprep.mubr.msk.f32.mxu0 %vm489_vm0, %v490_v1  ;;  %v70_v10 = vld [vmem:[#allocation2] sm:$0xff]  ;;  %p462_p13 = por %p461_p12, %p460_p11 }
  0x40   :  { %369 = vmatmul.mubr.msk.f32.vlgmr.msra.gmra.mrb[0].mxu1 %vm71_vm2, %v491_v9  ;;  %v156_v20 = vld [vmem:[#allocation3] sm:$0x1]  ;;  %p463_p0 = pnand %p462_p13, %p456_p10 }
 0x110   :  { %v141_v11 = vpop.f32.mrb[0].mxu0 }
 0x111   :  { %v145_v12 = vadd.f32 %v141_v11, %v70_v10  ;;  %v365_v13 = vpop.f32.mrb[1].mxu0 }
 0x113   :  { %147 = vst.msk [vmem:[#allocation2] sm:$0xff] %vm66_vm1, %v145_v12  ;;  %v229_v21 = vpop.f32.mrb[0].mxu1 }
 0x114   :  { %v233_v22 = vadd.f32 %v229_v21, %v156_v20  ;;  %v370_v23 = vpop.f32.mrb[1].mxu1 }
 0x116   :  { %235 = vst.msk [vmem:[#allocation3] sm:$0x1] %vm68_vm3, %v233_v22 }
 0x11a   :  { %v242_v17 = vld [vmem:[#allocation2] sm:$0xff] }
 0x11b   :  { %v249_v18 = vadd.f32 %v349_v15, %v242_v17 }
 0x11d   :  { %v250_v19 = vmul.f32 %v249_v18, %v240_v16  ;;  %v251_v24 = vld [vmem:[#allocation3] sm:$0x1] }
 0x11f   :  { %372 = vmatpush3.xpose.msk.msra.mxu0 %vm66_vm1, %v250_v19 }
 0x122   :  { %374 = vmatmul.mubr.msk.f32.vlgmr.msra.gmra.mrb[2].mxu0 %vm66_vm1, %v491_v9 }
 0x1f5   :  { %v323_v25 = vpop.f32.mrb[2].mxu0 }
 0x1f6   :  { %v324_v26 = vadd.f32 %v323_v25, %v251_v24  ;;  %v375_v27 = vpop.f32.mrb[3].mxu0 }
 0x1f8   :  { %v327_v28 = vsub.f32 0.0, %v324_v26 }
 0x1fa   :  { %328 = vst.msk [vmem:[#allocation10] sm:$0x1] %vm68_vm3, %v327_v28 }
 0x1fb   :  { %466 = shalt.err (!%p463_p0)
}
 0x1fc   :  { %s467_s11 = scalar_lea.hbm %s589_s5, 16 }
 0x1fd   :  { %p468_p1 = scmp.ne.s32.totalorder %s589_s5, %s467_s11  ;;  %p471_p2 = scmp.lt.u32.totalorder %s467_s11, %s589_s5 }
 0x1ff   :  { %p473_p3 = pnand %p471_p2, %p468_p1 }
 0x201   :  { %476 = shalt.err (!%p473_p3)
}
 0x202   :  { %338 = dma.vmem_to_hbm [thread:$0]  %s336_s7, 16, %s589_s5, [#allocation6]  }
 0x203   :  { %481 = dma.done.wait [#allocation6], 16  }
 0x204   :  { %482 = vsyncadd [#allocation6], 4294967280 }
 0x205   :  { %342 = vsyncpa [#allocation5], 1 }
 0x206   :  { %343 = vsyncpa [#allocation8], 1 }
 0x207   :  { %344 = vsyncpa [#allocation6], 1 }

</bundles_post_ra>
